<compile_context>
chip_gen: v5e
topology: v5e:2x2
jax: 0.10.0
libtpu: 0.0.40
codegen_flags: <defaults>
</compile_context>

<pallas_src>
import functools
import math

import jax
import jax.numpy as jnp
from jax.experimental import pallas as pl
from jax.experimental.pallas import tpu as pltpu


# ------------------------------ in-kernel helpers ------------------------------

def _layernorm(h, g, b, eps):
    mu = jnp.mean(h, axis=-1, keepdims=True)
    var = jnp.mean(jnp.square(h - mu), axis=-1, keepdims=True)
    return (h - mu) * jax.lax.rsqrt(var + eps) * g + b


# --------------------------------- kernels -------------------------------------

def qkv_proj_kernel(x_ref, g_ref, b_ref, w_ref, bias_ref, o_ref, *, eps):
    """LN1 + fused QKV projection over a row tile.  1/sqrt(Dh) is pre-folded into the q
    columns of w/bias on the host; output is emitted directly in bf16 (f32 accumulate)."""
    h = _layernorm(x_ref[...], g_ref[...], b_ref[...], eps)
    qkv = jnp.dot(h.astype(w_ref.dtype), w_ref[...],
                  preferred_element_type=jnp.float32) + bias_ref[...]
    o_ref[...] = qkv.astype(o_ref.dtype)


def flash_attn_kernel(q_ref, k_ref, v_ref, o_ref, m_scr, l_scr, acc_scr, *, tq, tk):
    """Causal flash attention.  Heads are the batch dim of a single MXU einsum (no per-head
    Dh-wide slicing / masked stores).  Grid = (B, n_q_tiles, n_kv_tiles); kv axis is the
    online-softmax reduction; fully masked kv tiles (above the diagonal) are skipped."""
    qi = pl.program_id(1)
    ki = pl.program_id(2)

    @pl.when(ki == 0)
    def _init():
        m_scr[...] = jnp.full_like(m_scr, -jnp.inf)
        l_scr[...] = jnp.zeros_like(l_scr)
        acc_scr[...] = jnp.zeros_like(acc_scr)

    # With tq == tk and aligned tiles, kv tiles strictly above the diagonal are fully
    # masked -> skip all compute for them.
    @pl.when(ki <= qi)
    def _compute():
        q = q_ref[0]                                        # (H, tq, Dh) bf16, scale folded
        k = k_ref[0]                                        # (H, tk, Dh) bf16
        v = v_ref[0]                                        # (H, tk, Dh) bf16
        s = jnp.einsum("hqd,hkd->hqk", q, k,
                       preferred_element_type=jnp.float32)  # (H, tq, tk) f32
        # per-tile causal mask from program-id-derived offsets (no (S,S) iota).
        row = qi * tq + jax.lax.broadcasted_iota(jnp.int32, (tq, tk), 0)
        col = ki * tk + jax.lax.broadcasted_iota(jnp.int32, (tq, tk), 1)
        s = jnp.where((row >= col)[None, :, :], s, -1e30)

        m_prev = m_scr[...]                                 # (H, tq, 1)
        m_new = jnp.maximum(m_prev, jnp.max(s, axis=-1, keepdims=True))
        alpha = jnp.exp(m_prev - m_new)
        p = jnp.exp(s - m_new)
        l_scr[...] = alpha * l_scr[...] + jnp.sum(p, axis=-1, keepdims=True)
        acc_scr[...] = alpha * acc_scr[...] + jnp.einsum(
            "hqk,hkd->hqd", p.astype(v.dtype), v, preferred_element_type=jnp.float32)
        m_scr[...] = m_new

    # The diagonal tile is the last non-skipped kv step for this q tile -> finalize there.
    @pl.when(ki == qi)
    def _epilogue():
        # approx EUP reciprocal (~2^-12 rel err): fine for inference-grade numerics.
        inv_l = pl.reciprocal(l_scr[...], approx=True)
        o_ref[0] = (acc_scr[...] * inv_l).astype(o_ref.dtype)


def post_attn_ffn_kernel(x_ref, ctx_ref, wo_ref, bo_ref, ln2g_ref, ln2b_ref,
                         w1_ref, b1_ref, w2_ref, b2_ref, o_ref, *, eps):
    """Output projection + attention residual + LN2 + FFN(GELU) + residual, fused over a
    row tile so x1 never round-trips HBM."""
    x = x_ref[...]                                          # (tm, D) f32
    proj = jnp.dot(ctx_ref[...], wo_ref[...],
                   preferred_element_type=jnp.float32) + bo_ref[...]
    x1 = x + proj                                           # attention residual (VMEM only)
    h = _layernorm(x1, ln2g_ref[...], ln2b_ref[...], eps)
    f = jnp.dot(h.astype(w1_ref.dtype), w1_ref[...],
                preferred_element_type=jnp.float32) + b1_ref[...]
    # exact GELU to match nn.GELU() default (v5e note: tanh-approx only if accuracy allows).
    f = jax.nn.gelu(f, approximate=False)
    y = jnp.dot(f.astype(w2_ref.dtype), w2_ref[...],
                preferred_element_type=jnp.float32) + b2_ref[...]
    o_ref[...] = (x1 + y).astype(o_ref.dtype)


# --------------------------------- wrapper --------------------------------------

def _fold_lora_T(w, a, lb):
    # Exact algebra in f32: W_eff = W + B @ A (LoRA scaling = 1), then (in, out) layout so
    # kernels never transpose a VMEM value.
    f32 = jnp.float32
    return (w.astype(f32) + lb.astype(f32) @ a.astype(f32)).T


def _pick_tile(n, cap):
    """Largest multiple of 16 that divides n (capped); else the full extent (legal block)."""
    # TODO(synk): pad n up to a multiple of 16 instead of the full-extent fallback.
    best = None
    t = 16
    while t <= min(n, cap):
        if n % t == 0:
            best = t
        t += 16
    return best if best is not None else n


def _const_spec(arr, *, single_buffer):
    """Whole-array operand with a grid-invariant index map.  With single_buffer=True the
    operand is kept in one VMEM buffer (no 2x double-buffer residency for weights)."""
    nd = arr.ndim
    idx = lambda *_: (0,) * nd
    if single_buffer:
        try:
            return pl.BlockSpec(arr.shape, idx, pipeline_mode=pl.Buffered(1))
        except (TypeError, AttributeError):
            pass
    return pl.BlockSpec(arr.shape, idx)


def gpt2_block(x, params, *, n_heads, eps, single_buffer_weights=True):
    B, S, D = x.shape
    assert D % n_heads == 0
    Dh = D // n_heads
    f32, bf16 = jnp.float32, jnp.bfloat16

    try:
        phys_vmem = int(pltpu.get_tpu_info().vmem_capacity_bytes)
    except Exception:
        phys_vmem = 64 << 20                     # conservative: v7x per-core VMEM

    def vmem_limit(est):
        # estimated resident set x2 margin, sized against this generation's physical VMEM.
        return int(min(max(2 * est, 32 << 20), int(phys_vmem * 0.85)))

    # ---------- host-side prep: fold LoRA + softmax scale, (in,out) layout, bf16 ----------
    # NOTE: bf16 cast of W_eff slightly rounds the small LoRA delta; keep W_eff in f32 if
    # training-grade adapter fidelity is required (fold itself is exact, in f32).
    wqkv = _fold_lora_T(params["wqkv"], params["aqkv"], params["lbqkv"])     # (D, 3D) f32
    wo = _fold_lora_T(params["wo"], params["ao"], params["lbo"])             # (D, D)
    w1 = _fold_lora_T(params["w1"], params["a1"], params["lb1"])             # (D, 4D)
    w2 = _fold_lora_T(params["w2"], params["a2"], params["lb2"])             # (4D, D)

    # fold 1/sqrt(Dh) into the q columns of the qkv projection (weight AND bias).
    col_scale = jnp.concatenate(
        [jnp.full((D,), 1.0 / math.sqrt(Dh), f32), jnp.ones((2 * D,), f32)])
    wqkv = (wqkv * col_scale[None, :]).astype(bf16)
    bqkv = params["bqkv"].astype(f32) * col_scale[None, :]
    wo, w1, w2 = wo.astype(bf16), w1.astype(bf16), w2.astype(bf16)
    bo = params["bo"].astype(f32)
    b1 = params["b1"].astype(f32)
    b2 = params["b2"].astype(f32)
    ln1g, ln1b = params["ln1g"].astype(f32), params["ln1b"].astype(f32)
    ln2g, ln2b = params["ln2g"].astype(f32), params["ln2b"].astype(f32)
    d_ff = w1.shape[1]

    rows = B * S
    x2d = x.reshape(rows, D)
    row_cap = 512 if phys_vmem >= (100 << 20) else 256       # smaller row tiles on v7x
    tm = _pick_tile(rows, row_cap)

    wspec = functools.partial(_const_spec, single_buffer=single_buffer_weights)
    vspec = functools.partial(_const_spec, single_buffer=False)   # tiny vectors: default

    # ----------------------- call 1: LN1 + QKV projection (rows-tiled) -----------------
    est_qkv = (4 * tm * D * 4 + 4 * tm * 3 * D * 2 + wqkv.size * 2
               + (bqkv.size + ln1g.size + ln1b.size) * 4 * 8 + 2 * tm * 3 * D * 4)
    qkv = pl.pallas_call(
        functools.partial(qkv_proj_kernel, eps=eps),
        out_shape=jax.ShapeDtypeStruct((rows, 3 * D), bf16),
        grid_spec=pltpu.PrefetchScalarGridSpec(
            num_scalar_prefetch=0,
            grid=(rows // tm,),
            in_specs=[pl.BlockSpec((tm, D), lambda i: (i, 0)),
                      vspec(ln1g), vspec(ln1b), wspec(wqkv), vspec(bqkv)],
            out_specs=pl.BlockSpec((tm, 3 * D), lambda i: (i, 0)),
        ),
        compiler_params=pltpu.CompilerParams(
            dimension_semantics=("parallel",),
            vmem_limit_bytes=vmem_limit(est_qkv),
        ),
    )(x2d, ln1g, ln1b, wqkv, bqkv)

    # head-major layout for the flash kernel: wrapper-side reshape/transpose is layout
    # plumbing in XLA and keeps the kernel free of Dh-wide lane-sparse slicing.
    qkv_h = qkv.reshape(B, S, 3, n_heads, Dh).transpose(2, 0, 3, 1, 4)   # (3, B, H, S, Dh)
    q, k, v = qkv_h[0], qkv_h[1], qkv_h[2]

    # --------------------- call 2: flash causal attention ------------------------------
    tq = _pick_tile(S, 256)         # >=256-row tiles amortize the shallow (Dh) contraction
    nq = S // tq
    est_attn = (8 * n_heads * tq * Dh * 2           # q/k/v/out blocks (2 buffers each)
                + n_heads * tq * Dh * 4             # acc scratch
                + 2 * n_heads * tq * 128 * 4        # m/l scratch (lane-padded)
                + 4 * n_heads * tq * tq * 4)        # scores/probs temporaries
    ctx = pl.pallas_call(
        functools.partial(flash_attn_kernel, tq=tq, tk=tq),
        out_shape=jax.ShapeDtypeStruct((B, n_heads, S, Dh), bf16),
        grid_spec=pltpu.PrefetchScalarGridSpec(
            num_scalar_prefetch=0,
            grid=(B, nq, nq),
            in_specs=[
                pl.BlockSpec((1, n_heads, tq, Dh), lambda b, qi, ki: (b, 0, qi, 0)),
                # clamp above-diagonal kv tiles to the diagonal: compute is skipped there
                # and the repeated block index elides the DMA.
                pl.BlockSpec((1, n_heads, tq, Dh),
                             lambda b, qi, ki: (b, 0, jnp.minimum(ki, qi), 0)),
                pl.BlockSpec((1, n_heads, tq, Dh),
                             lambda b, qi, ki: (b, 0, jnp.minimum(ki, qi), 0)),
            ],
            out_specs=pl.BlockSpec((1, n_heads, tq, Dh), lambda b, qi, ki: (b, 0, qi, 0)),
            scratch_shapes=[pltpu.VMEM((n_heads, tq, 1), jnp.float32),
                            pltpu.VMEM((n_heads, tq, 1), jnp.float32),
                            pltpu.VMEM((n_heads, tq, Dh), jnp.float32)],
        ),
        compiler_params=pltpu.CompilerParams(
            dimension_semantics=("parallel", "parallel", "arbitrary"),
            vmem_limit_bytes=vmem_limit(est_attn),
        ),
    )(q, k, v)
    ctx2d = ctx.transpose(0, 2, 1, 3).reshape(rows, D)      # merge heads back (lane-dense)

    # ------- call 3: output proj + residual + LN2 + FFN + residual (rows-tiled) ---------
    est_post = (10 * tm * D * 4 + 2 * tm * d_ff * 4
                + (wo.size + w1.size + w2.size) * 2
                + (bo.size + b1.size + b2.size + ln2g.size + ln2b.size) * 4 * 8)
    out2d = pl.pallas_call(
        functools.partial(post_attn_ffn_kernel, eps=eps),
        out_shape=jax.ShapeDtypeStruct((rows, D), x.dtype),
        grid_spec=pltpu.PrefetchScalarGridSpec(
            num_scalar_prefetch=0,
            grid=(rows // tm,),
            in_specs=[pl.BlockSpec((tm, D), lambda i: (i, 0)),       # x (residual)
                      pl.BlockSpec((tm, D), lambda i: (i, 0)),       # attention context
                      wspec(wo), vspec(bo), vspec(ln2g), vspec(ln2b),
                      wspec(w1), vspec(b1), wspec(w2), vspec(b2)],
            out_specs=pl.BlockSpec((tm, D), lambda i: (i, 0)),
        ),
        compiler_params=pltpu.CompilerParams(
            dimension_semantics=("parallel",),
            vmem_limit_bytes=vmem_limit(est_post),
        ),
    )(x2d, ctx2d, wo, bo, ln2g, ln2b, w1, b1, w2, b2)
    return out2d.reshape(B, S, D)


# ----------------------------- pure-JAX reference --------------------------------

def reference_block(x, p, *, n_heads, eps):
    def ln(h, g, b):
        mu = jnp.mean(h, -1, keepdims=True)
        var = jnp.mean((h - mu) ** 2, -1, keepdims=True)
        return (h - mu) / jnp.sqrt(var + eps) * g + b

    def lin(h, w, b, a, lb):
        return h @ w.T + b + (h @ a.T) @ lb.T

    B, S, D = x.shape
    Dh = D // n_heads
    h = ln(x, p["ln1g"], p["ln1b"])
    qkv = lin(h, p["wqkv"], p["bqkv"], p["aqkv"], p["lbqkv"])
    q, k, v = jnp.split(qkv, 3, axis=-1)

    def split_heads(t):
        return t.reshape(B, S, n_heads, Dh).transpose(0, 2, 1, 3)

    q, k, v = split_heads(q), split_heads(k), split_heads(v)
    s = jnp.einsum("bhqd,bhkd->bhqk", q, k) / (Dh ** 0.5)
    mask = jnp.tril(jnp.ones((S, S), bool))
    s = jnp.where(mask, s, -1e30)
    p_attn = jax.nn.softmax(s, axis=-1)
    o = jnp.einsum("bhqk,bhkd->bhqd", p_attn, v).transpose(0, 2, 1, 3).reshape(B, S, D)
    o = lin(o, p["wo"], p["bo"], p["ao"], p["lbo"])
    x1 = x + o

    h2 = ln(x1, p["ln2g"], p["ln2b"])
    f = lin(h2, p["w1"], p["b1"], p["a1"], p["lb1"])
    f = jax.nn.gelu(f, approximate=False)
    f = lin(f, p["w2"], p["b2"], p["a2"], p["lb2"])
    return x1 + f


# ------------------------------------- main ---------------------------------------

if __name__ == "__main__":
    B, S, D, H, R = 2, 8, 32, 4, 4
    D_FF = 4 * D
    EPS = 1e-5

    key = jax.random.PRNGKey(0)
    ks = iter(jax.random.split(key, 32))

    def rnd(shape, scale=0.02):
        return jax.random.normal(next(ks), shape, jnp.float32) * scale

    params = {
        # attn norm
        "ln1g": 1.0 + rnd((1, D)), "ln1b": rnd((1, D)),
        # qkv LoRA-linear
        "wqkv": rnd((3 * D, D)), "bqkv": rnd((1, 3 * D)),
        "aqkv": rnd((R, D)), "lbqkv": rnd((3 * D, R)),
        # output projection LoRA-linear
        "wo": rnd((D, D)), "bo": rnd((1, D)),
        "ao": rnd((R, D)), "lbo": rnd((D, R)),
        # ffn norm
        "ln2g": 1.0 + rnd((1, D)), "ln2b": rnd((1, D)),
        # ffn linear_in
        "w1": rnd((D_FF, D)), "b1": rnd((1, D_FF)),
        "a1": rnd((R, D)), "lb1": rnd((D_FF, R)),
        # ffn linear_out
        "w2": rnd((D, D_FF)), "b2": rnd((1, D)),
        "a2": rnd((R, D_FF)), "lb2": rnd((D, R)),
    }

    x = jax.random.normal(next(ks), (B, S, D), jnp.float32)

    try:
        out = gpt2_block(x, params, n_heads=H, eps=EPS, single_buffer_weights=True)
        out = jax.block_until_ready(out)
    except Exception:
        # pl.Buffered(1) (single-buffered weight operands) unsupported on this jax
        # version -> fall back to default double-buffered weight specs.
        out = gpt2_block(x, params, n_heads=H, eps=EPS, single_buffer_weights=False)
        out = jax.block_until_ready(out)

    ref = reference_block(x, params, n_heads=H, eps=EPS)
    assert out.shape == (B, S, D)
    # Tolerance reflects bf16 MXU operands and the approximate EUP reciprocal in the
    # softmax normalization (all accumulation stays f32).
    err = float(jnp.max(jnp.abs(out - ref)))
    assert jnp.allclose(out, ref, atol=2e-2, rtol=2e-2), f"mismatch vs reference, max|diff|={err}"

    print("KERNEL_OK")
</pallas_src>

<mosaic_0001>
module attributes {stable_mosaic.version = 11 : i64} {
  func.func @qkv_proj_kernel(%arg0: i32, %arg1: memref<16x32xf32, #tpu.memory_space<vmem>>, %arg2: memref<1x32xf32, #tpu.memory_space<vmem>>, %arg3: memref<1x32xf32, #tpu.memory_space<vmem>>, %arg4: memref<32x96xbf16, #tpu.memory_space<vmem>>, %arg5: memref<1x96xf32, #tpu.memory_space<vmem>>, %arg6: memref<16x96xbf16, #tpu.memory_space<vmem>>) attributes {dimension_semantics = [#tpu.dimension_semantics<parallel>], iteration_bounds = array<i64: 1>, scalar_prefetch = 0 : i64, scratch_operands = 0 : i64, tpu.core_type = #tpu.core_type<tc>, window_params = [{transform_indices = @transform_0, window_bounds = array<i64: 16, 32>}, {pipeline_mode = #tpu.pipeline_mode<synchronous>, transform_indices = @transform_1, window_bounds = array<i64: 1, 32>}, {pipeline_mode = #tpu.pipeline_mode<synchronous>, transform_indices = @transform_2, window_bounds = array<i64: 1, 32>}, {pipeline_mode = #tpu.pipeline_mode<synchronous>, transform_indices = @transform_3, window_bounds = array<i64: 32, 96>}, {pipeline_mode = #tpu.pipeline_mode<synchronous>, transform_indices = @transform_4, window_bounds = array<i64: 1, 96>}, {transform_indices = @transform_5, window_bounds = array<i64: 16, 96>}]} {
    %c0 = arith.constant 0 : index
    %c0_0 = arith.constant 0 : index
    %0 = vector.load %arg1[%c0, %c0_0] : memref<16x32xf32, #tpu.memory_space<vmem>>, vector<16x32xf32>
    %c0_1 = arith.constant 0 : index
    %c0_2 = arith.constant 0 : index
    %1 = vector.load %arg2[%c0_1, %c0_2] : memref<1x32xf32, #tpu.memory_space<vmem>>, vector<1x32xf32>
    %c0_3 = arith.constant 0 : index
    %c0_4 = arith.constant 0 : index
    %2 = vector.load %arg3[%c0_3, %c0_4] : memref<1x32xf32, #tpu.memory_space<vmem>>, vector<1x32xf32>
    %cst = arith.constant dense<0.000000e+00> : vector<16xf32>
    %3 = vector.multi_reduction <add>, %0, %cst [1] : vector<16x32xf32> to vector<16xf32>
    %4 = vector.shape_cast %3 : vector<16xf32> to vector<16x1xf32>
    %cst_5 = arith.constant 3.200000e+01 : f32
    %5 = vector.broadcast %cst_5 : f32 to vector<16x1xf32>
    %6 = arith.divf %4, %5 : vector<16x1xf32>
    %7 = vector.broadcast %6 : vector<16x1xf32> to vector<16x32xf32>
    %8 = arith.subf %0, %7 : vector<16x32xf32>
    %9 = arith.mulf %8, %8 : vector<16x32xf32>
    %cst_6 = arith.constant dense<0.000000e+00> : vector<16xf32>
    %10 = vector.multi_reduction <add>, %9, %cst_6 [1] : vector<16x32xf32> to vector<16xf32>
    %11 = vector.shape_cast %10 : vector<16xf32> to vector<16x1xf32>
    %cst_7 = arith.constant 3.200000e+01 : f32
    %12 = vector.broadcast %cst_7 : f32 to vector<16x1xf32>
    %13 = arith.divf %11, %12 : vector<16x1xf32>
    %14 = vector.broadcast %6 : vector<16x1xf32> to vector<16x32xf32>
    %15 = arith.subf %0, %14 : vector<16x32xf32>
    %cst_8 = arith.constant 9.99999974E-6 : f32
    %16 = vector.broadcast %cst_8 : f32 to vector<16x1xf32>
    %17 = arith.addf %13, %16 : vector<16x1xf32>
    %18 = math.rsqrt %17 : vector<16x1xf32>
    %19 = vector.broadcast %18 : vector<16x1xf32> to vector<16x32xf32>
    %20 = arith.mulf %15, %19 : vector<16x32xf32>
    %21 = vector.broadcast %1 : vector<1x32xf32> to vector<16x32xf32>
    %22 = arith.mulf %20, %21 : vector<16x32xf32>
    %23 = vector.broadcast %2 : vector<1x32xf32> to vector<16x32xf32>
    %24 = arith.addf %22, %23 : vector<16x32xf32>
    %25 = arith.truncf %24 : vector<16x32xf32> to vector<16x32xbf16>
    %c0_9 = arith.constant 0 : index
    %c0_10 = arith.constant 0 : index
    %26 = vector.load %arg4[%c0_9, %c0_10] : memref<32x96xbf16, #tpu.memory_space<vmem>>, vector<32x96xbf16>
    %cst_11 = arith.constant dense<0.000000e+00> : vector<16x96xf32>
    %27 = tpu.matmul %25, %26, %cst_11 {dimension_numbers = #tpu.dot_dimension_numbers<[1], [0], [0], [1], [0, 0, 1, 1], [], []>} : vector<16x32xbf16>, vector<32x96xbf16>, vector<16x96xf32> -> vector<16x96xf32>
    %c0_12 = arith.constant 0 : index
    %c0_13 = arith.constant 0 : index
    %28 = vector.load %arg5[%c0_12, %c0_13] : memref<1x96xf32, #tpu.memory_space<vmem>>, vector<1x96xf32>
    %29 = vector.broadcast %28 : vector<1x96xf32> to vector<16x96xf32>
    %30 = arith.addf %27, %29 : vector<16x96xf32>
    %31 = arith.truncf %30 : vector<16x96xf32> to vector<16x96xbf16>
    %c0_14 = arith.constant 0 : index
    %c0_15 = arith.constant 0 : index
    %32 = vector.load %arg6[%c0_14, %c0_15] : memref<16x96xbf16, #tpu.memory_space<vmem>>, vector<16x96xbf16>
    tpu.vector_store %arg6[%c0_14, %c0_15], %31 {strides = array<i32>} : memref<16x96xbf16, #tpu.memory_space<vmem>>, vector<16x96xbf16>,
    return
  }
  func.func @transform_0(%arg0: i32) -> (i32, i32) {
    %c0_i32 = arith.constant 0 : i32
    %c0_i32_0 = arith.constant 0 : i32
    return %arg0, %c0_i32 : i32, i32
  }
  func.func @transform_1(%arg0: i32) -> (i32, i32) {
    %c0_i32 = arith.constant 0 : i32
    %c0_i32_0 = arith.constant 0 : i32
    %c0_i32_1 = arith.constant 0 : i32
    return %c0_i32, %c0_i32_0 : i32, i32
  }
  func.func @transform_2(%arg0: i32) -> (i32, i32) {
    %c0_i32 = arith.constant 0 : i32
    %c0_i32_0 = arith.constant 0 : i32
    %c0_i32_1 = arith.constant 0 : i32
    return %c0_i32, %c0_i32_0 : i32, i32
  }
  func.func @transform_3(%arg0: i32) -> (i32, i32) {
    %c0_i32 = arith.constant 0 : i32
    %c0_i32_0 = arith.constant 0 : i32
    %c0_i32_1 = arith.constant 0 : i32
    return %c0_i32, %c0_i32_0 : i32, i32
  }
  func.func @transform_4(%arg0: i32) -> (i32, i32) {
    %c0_i32 = arith.constant 0 : i32
    %c0_i32_0 = arith.constant 0 : i32
    %c0_i32_1 = arith.constant 0 : i32
    return %c0_i32, %c0_i32_0 : i32, i32
  }
  func.func @transform_5(%arg0: i32) -> (i32, i32) {
    %c0_i32 = arith.constant 0 : i32
    %c0_i32_0 = arith.constant 0 : i32
    return %arg0, %c0_i32 : i32, i32
  }
}

module attributes {stable_mosaic.version = 11 : i64} {
  func.func @qkv_proj_kernel(%arg0: i32, %arg1: memref<16x32xf32, #tpu.memory_space<vmem>>, %arg2: memref<1x32xf32, #tpu.memory_space<vmem>>, %arg3: memref<1x32xf32, #tpu.memory_space<vmem>>, %arg4: memref<32x96xbf16, #tpu.memory_space<vmem>>, %arg5: memref<1x96xf32, #tpu.memory_space<vmem>>, %arg6: memref<16x96xbf16, #tpu.memory_space<vmem>>) attributes {dimension_semantics = [#tpu.dimension_semantics<parallel>], iteration_bounds = array<i64: 1>, scalar_prefetch = 0 : i64, scratch_operands = 0 : i64, tpu.core_type = #tpu.core_type<tc>, window_params = [{transform_indices = @transform_0, window_bounds = array<i64: 16, 32>}, {pipeline_mode = #tpu.pipeline_mode<synchronous>, transform_indices = @transform_1, window_bounds = array<i64: 1, 32>}, {pipeline_mode = #tpu.pipeline_mode<synchronous>, transform_indices = @transform_2, window_bounds = array<i64: 1, 32>}, {pipeline_mode = #tpu.pipeline_mode<synchronous>, transform_indices = @transform_3, window_bounds = array<i64: 32, 96>}, {pipeline_mode = #tpu.pipeline_mode<synchronous>, transform_indices = @transform_4, window_bounds = array<i64: 1, 96>}, {transform_indices = @transform_5, window_bounds = array<i64: 16, 96>}]} {
    %c0 = arith.constant 0 : index
    %c0_0 = arith.constant 0 : index
    %0 = vector.load %arg1[%c0, %c0_0] : memref<16x32xf32, #tpu.memory_space<vmem>>, vector<16x32xf32>
    %c0_1 = arith.constant 0 : index
    %c0_2 = arith.constant 0 : index
    %1 = vector.load %arg2[%c0_1, %c0_2] : memref<1x32xf32, #tpu.memory_space<vmem>>, vector<1x32xf32>
    %c0_3 = arith.constant 0 : index
    %c0_4 = arith.constant 0 : index
    %2 = vector.load %arg3[%c0_3, %c0_4] : memref<1x32xf32, #tpu.memory_space<vmem>>, vector<1x32xf32>
    %cst = arith.constant dense<0.000000e+00> : vector<16xf32>
    %3 = vector.multi_reduction <add>, %0, %cst [1] : vector<16x32xf32> to vector<16xf32>
    %4 = vector.shape_cast %3 : vector<16xf32> to vector<16x1xf32>
    %cst_5 = arith.constant 3.200000e+01 : f32
    %5 = vector.broadcast %cst_5 : f32 to vector<16x1xf32>
    %6 = arith.divf %4, %5 : vector<16x1xf32>
    %7 = vector.broadcast %6 : vector<16x1xf32> to vector<16x32xf32>
    %8 = arith.subf %0, %7 : vector<16x32xf32>
    %9 = arith.mulf %8, %8 : vector<16x32xf32>
    %cst_6 = arith.constant dense<0.000000e+00> : vector<16xf32>
    %10 = vector.multi_reduction <add>, %9, %cst_6 [1] : vector<16x32xf32> to vector<16xf32>
    %11 = vector.shape_cast %10 : vector<16xf32> to vector<16x1xf32>
    %cst_7 = arith.constant 3.200000e+01 : f32
    %12 = vector.broadcast %cst_7 : f32 to vector<16x1xf32>
    %13 = arith.divf %11, %12 : vector<16x1xf32>
    %14 = vector.broadcast %6 : vector<16x1xf32> to vector<16x32xf32>
    %15 = arith.subf %0, %14 : vector<16x32xf32>
    %cst_8 = arith.constant 9.99999974E-6 : f32
    %16 = vector.broadcast %cst_8 : f32 to vector<16x1xf32>
    %17 = arith.addf %13, %16 : vector<16x1xf32>
    %18 = math.rsqrt %17 : vector<16x1xf32>
    %19 = vector.broadcast %18 : vector<16x1xf32> to vector<16x32xf32>
    %20 = arith.mulf %15, %19 : vector<16x32xf32>
    %21 = vector.broadcast %1 : vector<1x32xf32> to vector<16x32xf32>
    %22 = arith.mulf %20, %21 : vector<16x32xf32>
    %23 = vector.broadcast %2 : vector<1x32xf32> to vector<16x32xf32>
    %24 = arith.addf %22, %23 : vector<16x32xf32>
    %25 = arith.truncf %24 : vector<16x32xf32> to vector<16x32xbf16>
    %c0_9 = arith.constant 0 : index
    %c0_10 = arith.constant 0 : index
    %26 = vector.load %arg4[%c0_9, %c0_10] : memref<32x96xbf16, #tpu.memory_space<vmem>>, vector<32x96xbf16>
    %cst_11 = arith.constant dense<0.000000e+00> : vector<16x96xf32>
    %27 = tpu.matmul %25, %26, %cst_11 {dimension_numbers = #tpu.dot_dimension_numbers<[1], [0], [0], [1], [0, 0, 1, 1], [], []>} : vector<16x32xbf16>, vector<32x96xbf16>, vector<16x96xf32> -> vector<16x96xf32>
    %c0_12 = arith.constant 0 : index
    %c0_13 = arith.constant 0 : index
    %28 = vector.load %arg5[%c0_12, %c0_13] : memref<1x96xf32, #tpu.memory_space<vmem>>, vector<1x96xf32>
    %29 = vector.broadcast %28 : vector<1x96xf32> to vector<16x96xf32>
    %30 = arith.addf %27, %29 : vector<16x96xf32>
    %31 = arith.truncf %30 : vector<16x96xf32> to vector<16x96xbf16>
    %c0_14 = arith.constant 0 : index
    %c0_15 = arith.constant 0 : index
    %32 = vector.load %arg6[%c0_14, %c0_15] : memref<16x96xbf16, #tpu.memory_space<vmem>>, vector<16x96xbf16>
    tpu.vector_store %arg6[%c0_14, %c0_15], %31 {strides = array<i32>} : memref<16x96xbf16, #tpu.memory_space<vmem>>, vector<16x96xbf16>,
    return
  }
  func.func @transform_0(%arg0: i32) -> (i32, i32) {
    %c0_i32 = arith.constant 0 : i32
    %c0_i32_0 = arith.constant 0 : i32
    return %arg0, %c0_i32 : i32, i32
  }
  func.func @transform_1(%arg0: i32) -> (i32, i32) {
    %c0_i32 = arith.constant 0 : i32
    %c0_i32_0 = arith.constant 0 : i32
    %c0_i32_1 = arith.constant 0 : i32
    return %c0_i32, %c0_i32_0 : i32, i32
  }
  func.func @transform_2(%arg0: i32) -> (i32, i32) {
    %c0_i32 = arith.constant 0 : i32
    %c0_i32_0 = arith.constant 0 : i32
    %c0_i32_1 = arith.constant 0 : i32
    return %c0_i32, %c0_i32_0 : i32, i32
  }
  func.func @transform_3(%arg0: i32) -> (i32, i32) {
    %c0_i32 = arith.constant 0 : i32
    %c0_i32_0 = arith.constant 0 : i32
    %c0_i32_1 = arith.constant 0 : i32
    return %c0_i32, %c0_i32_0 : i32, i32
  }
  func.func @transform_4(%arg0: i32) -> (i32, i32) {
    %c0_i32 = arith.constant 0 : i32
    %c0_i32_0 = arith.constant 0 : i32
    %c0_i32_1 = arith.constant 0 : i32
    return %c0_i32, %c0_i32_0 : i32, i32
  }
  func.func @transform_5(%arg0: i32) -> (i32, i32) {
    %c0_i32 = arith.constant 0 : i32
    %c0_i32_0 = arith.constant 0 : i32
    return %arg0, %c0_i32 : i32, i32
  }
}

</mosaic_0001>

<bundles_post_ra>
// kernel: tpu_custom_call.1
= control target key start
LH: loop header
LB: loop body
LE: loop exit
PB: predicated region body
PF: predicated region fallthrough
CT: control target
= control target key end

     0   :  { %10 = vsyncpa [#allocation3], 0  ;;  %s395_s0 = inlined_call_operand.hbm [shape: f32[16,32], index: 0, kind: input, shape index: {}]   ;;  %s396_s1 = inlined_call_operand.hbm [shape: f32[1,32], index: 1, kind: input, shape index: {}]   ;;  %s397_s2 = inlined_call_operand.vmem [shape: f32[1,32], index: 2, kind: input, shape index: {}]   ;;  %s398_s3 = inlined_call_operand.hbm [shape: bf16[32,96], index: 3, kind: input, shape index: {}]   ;;  %s399_s4 = inlined_call_operand.vmem [shape: f32[1,96], index: 4, kind: input, shape index: {}]   ;;  %s400_s5 = inlined_call_operand.hbm [shape: bf16[16,96], index: 5, kind: output, shape index: {}]  }
   0x1   :  { %11 = vsyncpa [#allocation6], 0  ;;  %s31_s20 = sshll.u32 %s396_s1, 4  ;;  %s32_s20 = int_to_ptr.hbm [resolvable:$true] %s31_s20 }
   0x2   :  { %12 = vsyncpa [#allocation4], 0  ;;  %s327_s21 = smov [#allocation5]   ;;  %s17_s25 = sshll.u32 %s395_s0, 4  ;;  %s18_s25 = int_to_ptr.hbm [resolvable:$true] %s17_s25 }
   0x3   :  { %s33_s22 = sshll.u32 %s327_s21, 4  ;;  %s328_s26 = smov [#allocation2]   ;;  %s34_s22 = int_to_ptr.vmem [resolvable:$true] %s33_s22 }
   0x4   :  { %36 = dma.hbm_to_vmem [thread:$0]  %s32_s20, 16, %s34_s22, [#allocation6]  }
   0x5   :  { %s19_s27 = sshll.u32 %s328_s26, 4  ;;  %s329_s28 = smov 128   ;;  %s20_s27 = int_to_ptr.vmem [resolvable:$true] %s19_s27 }
   0x6   :  { %s330_s29 = smov 8   ;;  %s43_s1 = sshll.u32 %s398_s3, 4  ;;  %s44_s1 = int_to_ptr.hbm [resolvable:$true] %s43_s1 }
   0x7   :  { %25 = dma.hbm_to_vmem [thread:$0]  %s18_s25, 256, %s20_s27, [#allocation3], %s329_s28, %s329_s28, %s330_s29  }
   0x8   :  { %s331_s7 = smov [#allocation7]   ;;  %s332_s9 = smov 64  }
   0x9   :  { %s45_s8 = sshll.u32 %s331_s7, 4  ;;  %s333_s10 = smov 4   ;;  %s46_s8 = int_to_ptr.vmem [resolvable:$true] %s45_s8 }
   0xa   :  { %51 = dma.hbm_to_vmem [thread:$0]  %s44_s1, 256, %s46_s8, [#allocation6], %s332_s9, %s332_s9, %s333_s10  }
   0xb   :  { %321 = dma.done.wait [#allocation3], 256  }
   0xc   :  { %322 = vsyncadd [#allocation3], 4294967040 }
   0xd   :  { %323 = dma.done.wait [#allocation6], 272  }
   0xe   :  { %324 = vsyncadd [#allocation6], 4294967024  ;;  %vm71_vm0 = vcmask 261120   ;;  %v67_v0 = vld [vmem:[#allocation2] sm:$0xff]  ;;  %v68_v2 = vld [vmem:[#allocation2 + $0x8] sm:$0xff]  ;;  %v334_v4 = vmov 32.0  }
   0xf   :  { %v72_v1 = vsel %vm71_vm0, %v67_v0, 0.0  ;;  %v75_v3 = vsel %vm71_vm0, %v68_v2, 0.0  ;;  %219 = vrcp.f32 %v334_v4  ;;  %v206_v21 = vld [vmem:[#allocation7 + $0x8] sm:$0xff]  ;;  %v205_v23 = vld [vmem:[#allocation7] sm:$0xff]  ;;  %v216_v42 = vld [vmem:[#allocation5] ss:$0 sm:$0xff] }
  0x10   :  { %73 = vadd.xlane.f32.xlu0 %v72_v1  ;;  %163 = vmatpush.bf16.msra.mxu0 %v206_v21  ;;  %v217_v47 = vld [vmem:[%s397_s2] ss:$0 sm:$0xff]  ;;  %vm173_vm8 = vcmask 781312   ;;  %s335_s13 = smov [#allocation8]   ;;  %s182_s16 = sshll.u32 %s400_s5, 4  ;;  %s183_s16 = int_to_ptr.hbm [resolvable:$true] %s182_s16 }
  0x11   :  { %v218_v52 = vld [vmem:[%s399_s4] ss:$0 sm:$0xff]  ;;  %s180_s14 = sshll.u32 %s335_s13, 4  ;;  %s181_s14 = int_to_ptr.vmem [resolvable:$true] %s180_s14 }
  0x14   :  { %164 = vmatpush.bf16.msra.mxu0 %v205_v23 }
  0x15   :  { %v220_v5 = vpop.eup %219 }
  0x16   :  { %v79_v6 = vmul.f32 32.0, %v220_v5  ;;  %vm83_vm1 = vweird.f32 %v220_v5 }
  0x18   :  { %76 = vadd.xlane.f32.xlu0 %v75_v3  ;;  %v80_v7 = vsub.f32 1.0, %v79_v6 }
  0x1a   :  { %v81_v8 = vmul.f32 %v220_v5, %v80_v7 }
  0x1c   :  { %v82_v9 = vadd.f32 %v220_v5, %v81_v8 }
  0x1e   :  { %v84_v10 = vsel %vm83_vm1, %v220_v5, %v82_v9 }
  0x83   :  { %v74_v11 = vpop.xlane.xlu0 %73 }
  0x84   :  { %v85_v12 = vmul.f32 %v84_v10, %v74_v11 }
  0x86   :  { %v87_v13 = vsub.f32 %v67_v0, %v85_v12 }
  0x88   :  { %v89_v14 = vmul.f32 %v87_v13, %v87_v13 }
  0x8a   :  { %v91_v15 = vsel %vm71_vm0, %v89_v14, 0.0 }
  0x8b   :  { %92 = vadd.xlane.f32.xlu1 %v91_v15  ;;  %v77_v16 = vpop.xlane.xlu0 %76 }
  0x8c   :  { %v86_v17 = vmul.f32 %v84_v10, %v77_v16 }
  0x8e   :  { %v88_v18 = vsub.f32 %v68_v2, %v86_v17 }
  0x90   :  { %v90_v19 = vmul.f32 %v88_v18, %v88_v18 }
  0x92   :  { %v94_v20 = vsel %vm71_vm0, %v90_v19, 0.0 }
  0x93   :  { %95 = vadd.xlane.f32.xlu1 %v94_v20 }
  0xfe   :  { %v93_v22 = vpop.xlane.xlu1 %92 }
  0xff   :  { %v97_v24 = vmul.f32 %v93_v22, %v84_v10 }
 0x101   :  { %v99_v25 = vadd.f32 1e-05, %v97_v24 }
 0x103   :  { %221 = vrsqrt.f32 %v99_v25  ;;  %vm107_vm3 = vweird.f32 %v99_v25 }
 0x106   :  { %v96_v26 = vpop.xlane.xlu1 %95 }
 0x107   :  { %v98_v27 = vmul.f32 %v96_v26, %v84_v10 }
 0x109   :  { %v222_v28 = vpop.eup %221  ;;  %v100_v29 = vadd.f32 1e-05, %v98_v27 }
 0x10a   :  { %v102_v30 = vmul.f32 %v222_v28, %v99_v25  ;;  %vm108_vm2 = vweird.f32 %v222_v28 }
 0x10b   :  { %223 = vrsqrt.f32 %v100_v29  ;;  %vm109_vm4 = vmor %vm107_vm3, %vm108_vm2  ;;  %vm117_vm6 = vweird.f32 %v100_v29 }
 0x10c   :  { %v103_v31 = vmul.f32 %v222_v28, %v102_v30 }
 0x10e   :  { %v104_v32 = vmul.f32 0.5, %v103_v31 }
 0x110   :  { %v105_v33 = vsub.f32 1.5, %v104_v32 }
 0x111   :  { %v224_v34 = vpop.eup %223 }
 0x112   :  { %v106_v35 = vmul.f32 %v222_v28, %v105_v33  ;;  %v112_v36 = vmul.f32 %v224_v34, %v100_v29  ;;  %vm118_vm5 = vweird.f32 %v224_v34 }
 0x113   :  { %vm119_vm7 = vmor %vm117_vm6, %vm118_vm5 }
 0x114   :  { %v113_v37 = vmul.f32 %v224_v34, %v112_v36  ;;  %v110_v38 = vsel %vm109_vm4, %v222_v28, %v106_v35 }
 0x115   :  { %v121_v41 = vmul.f32 %v110_v38, %v87_v13 }
 0x116   :  { %v114_v39 = vmul.f32 0.5, %v113_v37 }
 0x117   :  { %v126_v46 = vmul.f32 %v216_v42, %v121_v41 }
 0x118   :  { %v115_v40 = vsub.f32 1.5, %v114_v39 }
 0x119   :  { %v131_v49 = vadd.f32 %v217_v47, %v126_v46 }
 0x11a   :  { %v116_v43 = vmul.f32 %v224_v34, %v115_v40 }
 0x11c   :  { %v120_v44 = vsel %vm119_vm7, %v224_v34, %v116_v43 }
 0x11d   :  { %v122_v45 = vmul.f32 %v120_v44, %v88_v18 }
 0x11f   :  { %v127_v48 = vmul.f32 %v216_v42, %v122_v45 }
 0x121   :  { %v132_v50 = vadd.f32 %v217_v47, %v127_v48 }
 0x123   :  { %v133_v51 = vpack.c.bf16 %v132_v50, %v131_v49 }
 0x125   :  { %204 = vmatmul.msk.bf16.vlgmr.msra.gmra.mxu0 %vm71_vm0, %v133_v51 }
 0x1a2   :  { %v166_v53 = vpop.f32.mrf.mxu0 }
 0x1a3   :  { %v167_v54 = vadd.f32 %v218_v52, %v166_v53 }
 0x1a5   :  { %v171_v55 = vpack.c.bf16 %v167_v54, %v167_v54 }
 0x1a7   :  { %174 = vst.msk [vmem:[#allocation8] sm:$0xf] %vm173_vm8, %v171_v55 }
 0x1aa   :  { %v168_v56 = vpop.f32.mrf.mxu0 }
 0x1ab   :  { %v169_v57 = vadd.f32 %v218_v52, %v168_v56 }
 0x1ad   :  { %v172_v58 = vpack.c.bf16 %v169_v57, %v169_v57 }
 0x1af   :  { %175 = vst.msk [vmem:[#allocation8 + $0x4] sm:$0xf] %vm173_vm8, %v172_v58 }
 0x1b0   :  { %188 = dma.vmem_to_hbm [thread:$0]  %s181_s14, 128, %s183_s16, [#allocation4], %s332_s9, %s332_s9, %s333_s10  }
 0x1b1   :  { %325 = dma.done.wait [#allocation4], 128  }
 0x1b2   :  { %326 = vsyncadd [#allocation4], 4294967168 }
 0x1b3   :  { %193 = vsyncpa [#allocation3], 1 }
 0x1b4   :  { %194 = vsyncpa [#allocation6], 1 }
 0x1b5   :  { %195 = vsyncpa [#allocation4], 1 }

// kernel: tpu_custom_call.1
= control target key start
LH: loop header
LB: loop body
LE: loop exit
PB: predicated region body
PF: predicated region fallthrough
CT: control target
= control target key end

     0   :  { %10 = vsyncpa [#allocation3], 0  ;;  %s395_s0 = inlined_call_operand.hbm [shape: f32[16,32], index: 0, kind: input, shape index: {}]   ;;  %s396_s1 = inlined_call_operand.hbm [shape: f32[1,32], index: 1, kind: input, shape index: {}]   ;;  %s397_s2 = inlined_call_operand.vmem [shape: f32[1,32], index: 2, kind: input, shape index: {}]   ;;  %s398_s3 = inlined_call_operand.hbm [shape: bf16[32,96], index: 3, kind: input, shape index: {}]   ;;  %s399_s4 = inlined_call_operand.vmem [shape: f32[1,96], index: 4, kind: input, shape index: {}]   ;;  %s400_s5 = inlined_call_operand.hbm [shape: bf16[16,96], index: 5, kind: output, shape index: {}]  }
   0x1   :  { %11 = vsyncpa [#allocation6], 0  ;;  %s31_s20 = sshll.u32 %s396_s1, 4  ;;  %s32_s20 = int_to_ptr.hbm [resolvable:$true] %s31_s20 }
   0x2   :  { %12 = vsyncpa [#allocation4], 0  ;;  %s327_s21 = smov [#allocation5]   ;;  %s17_s25 = sshll.u32 %s395_s0, 4  ;;  %s18_s25 = int_to_ptr.hbm [resolvable:$true] %s17_s25 }
   0x3   :  { %s33_s22 = sshll.u32 %s327_s21, 4  ;;  %s328_s26 = smov [#allocation2]   ;;  %s34_s22 = int_to_ptr.vmem [resolvable:$true] %s33_s22 }
   0x4   :  { %36 = dma.hbm_to_vmem [thread:$0]  %s32_s20, 16, %s34_s22, [#allocation6]  }
   0x5   :  { %s19_s27 = sshll.u32 %s328_s26, 4  ;;  %s329_s28 = smov 128   ;;  %s20_s27 = int_to_ptr.vmem [resolvable:$true] %s19_s27 }
   0x6   :  { %s330_s29 = smov 8   ;;  %s43_s1 = sshll.u32 %s398_s3, 4  ;;  %s44_s1 = int_to_ptr.hbm [resolvable:$true] %s43_s1 }
   0x7   :  { %25 = dma.hbm_to_vmem [thread:$0]  %s18_s25, 256, %s20_s27, [#allocation3], %s329_s28, %s329_s28, %s330_s29  }
   0x8   :  { %s331_s7 = smov [#allocation7]   ;;  %s332_s9 = smov 64  }
   0x9   :  { %s45_s8 = sshll.u32 %s331_s7, 4  ;;  %s333_s10 = smov 4   ;;  %s46_s8 = int_to_ptr.vmem [resolvable:$true] %s45_s8 }
   0xa   :  { %51 = dma.hbm_to_vmem [thread:$0]  %s44_s1, 256, %s46_s8, [#allocation6], %s332_s9, %s332_s9, %s333_s10  }
   0xb   :  { %321 = dma.done.wait [#allocation3], 256  }
   0xc   :  { %322 = vsyncadd [#allocation3], 4294967040 }
   0xd   :  { %323 = dma.done.wait [#allocation6], 272  }
   0xe   :  { %324 = vsyncadd [#allocation6], 4294967024  ;;  %vm71_vm0 = vcmask 261120   ;;  %v67_v0 = vld [vmem:[#allocation2] sm:$0xff]  ;;  %v68_v2 = vld [vmem:[#allocation2 + $0x8] sm:$0xff]  ;;  %v334_v4 = vmov 32.0  }
   0xf   :  { %v72_v1 = vsel %vm71_vm0, %v67_v0, 0.0  ;;  %v75_v3 = vsel %vm71_vm0, %v68_v2, 0.0  ;;  %219 = vrcp.f32 %v334_v4  ;;  %v206_v21 = vld [vmem:[#allocation7 + $0x8] sm:$0xff]  ;;  %v205_v23 = vld [vmem:[#allocation7] sm:$0xff]  ;;  %v216_v42 = vld [vmem:[#allocation5] ss:$0 sm:$0xff] }
  0x10   :  { %73 = vadd.xlane.f32.xlu0 %v72_v1  ;;  %163 = vmatpush.bf16.msra.mxu0 %v206_v21  ;;  %v217_v47 = vld [vmem:[%s397_s2] ss:$0 sm:$0xff]  ;;  %vm173_vm8 = vcmask 781312   ;;  %s335_s13 = smov [#allocation8]   ;;  %s182_s16 = sshll.u32 %s400_s5, 4  ;;  %s183_s16 = int_to_ptr.hbm [resolvable:$true] %s182_s16 }
  0x11   :  { %v218_v52 = vld [vmem:[%s399_s4] ss:$0 sm:$0xff]  ;;  %s180_s14 = sshll.u32 %s335_s13, 4  ;;  %s181_s14 = int_to_ptr.vmem [resolvable:$true] %s180_s14 }
  0x14   :  { %164 = vmatpush.bf16.msra.mxu0 %v205_v23 }
  0x15   :  { %v220_v5 = vpop.eup %219 }
  0x16   :  { %v79_v6 = vmul.f32 32.0, %v220_v5  ;;  %vm83_vm1 = vweird.f32 %v220_v5 }
  0x18   :  { %76 = vadd.xlane.f32.xlu0 %v75_v3  ;;  %v80_v7 = vsub.f32 1.0, %v79_v6 }
  0x1a   :  { %v81_v8 = vmul.f32 %v220_v5, %v80_v7 }
  0x1c   :  { %v82_v9 = vadd.f32 %v220_v5, %v81_v8 }
  0x1e   :  { %v84_v10 = vsel %vm83_vm1, %v220_v5, %v82_v9 }
  0x83   :  { %v74_v11 = vpop.xlane.xlu0 %73 }
  0x84   :  { %v85_v12 = vmul.f32 %v84_v10, %v74_v11 }
  0x86   :  { %v87_v13 = vsub.f32 %v67_v0, %v85_v12 }
  0x88   :  { %v89_v14 = vmul.f32 %v87_v13, %v87_v13 }
  0x8a   :  { %v91_v15 = vsel %vm71_vm0, %v89_v14, 0.0 }
  0x8b   :  { %92 = vadd.xlane.f32.xlu1 %v91_v15  ;;  %v77_v16 = vpop.xlane.xlu0 %76 }
  0x8c   :  { %v86_v17 = vmul.f32 %v84_v10, %v77_v16 }
  0x8e   :  { %v88_v18 = vsub.f32 %v68_v2, %v86_v17 }
  0x90   :  { %v90_v19 = vmul.f32 %v88_v18, %v88_v18 }
  0x92   :  { %v94_v20 = vsel %vm71_vm0, %v90_v19, 0.0 }
  0x93   :  { %95 = vadd.xlane.f32.xlu1 %v94_v20 }
  0xfe   :  { %v93_v22 = vpop.xlane.xlu1 %92 }
  0xff   :  { %v97_v24 = vmul.f32 %v93_v22, %v84_v10 }
 0x101   :  { %v99_v25 = vadd.f32 1e-05, %v97_v24 }
 0x103   :  { %221 = vrsqrt.f32 %v99_v25  ;;  %vm107_vm3 = vweird.f32 %v99_v25 }
 0x106   :  { %v96_v26 = vpop.xlane.xlu1 %95 }
 0x107   :  { %v98_v27 = vmul.f32 %v96_v26, %v84_v10 }
 0x109   :  { %v222_v28 = vpop.eup %221  ;;  %v100_v29 = vadd.f32 1e-05, %v98_v27 }
 0x10a   :  { %v102_v30 = vmul.f32 %v222_v28, %v99_v25  ;;  %vm108_vm2 = vweird.f32 %v222_v28 }
 0x10b   :  { %223 = vrsqrt.f32 %v100_v29  ;;  %vm109_vm4 = vmor %vm107_vm3, %vm108_vm2  ;;  %vm117_vm6 = vweird.f32 %v100_v29 }
 0x10c   :  { %v103_v31 = vmul.f32 %v222_v28, %v102_v30 }
 0x10e   :  { %v104_v32 = vmul.f32 0.5, %v103_v31 }
 0x110   :  { %v105_v33 = vsub.f32 1.5, %v104_v32 }
 0x111   :  { %v224_v34 = vpop.eup %223 }
 0x112   :  { %v106_v35 = vmul.f32 %v222_v28, %v105_v33  ;;  %v112_v36 = vmul.f32 %v224_v34, %v100_v29  ;;  %vm118_vm5 = vweird.f32 %v224_v34 }
 0x113   :  { %vm119_vm7 = vmor %vm117_vm6, %vm118_vm5 }
 0x114   :  { %v113_v37 = vmul.f32 %v224_v34, %v112_v36  ;;  %v110_v38 = vsel %vm109_vm4, %v222_v28, %v106_v35 }
 0x115   :  { %v121_v41 = vmul.f32 %v110_v38, %v87_v13 }
 0x116   :  { %v114_v39 = vmul.f32 0.5, %v113_v37 }
 0x117   :  { %v126_v46 = vmul.f32 %v216_v42, %v121_v41 }
 0x118   :  { %v115_v40 = vsub.f32 1.5, %v114_v39 }
 0x119   :  { %v131_v49 = vadd.f32 %v217_v47, %v126_v46 }
 0x11a   :  { %v116_v43 = vmul.f32 %v224_v34, %v115_v40 }
 0x11c   :  { %v120_v44 = vsel %vm119_vm7, %v224_v34, %v116_v43 }
 0x11d   :  { %v122_v45 = vmul.f32 %v120_v44, %v88_v18 }
 0x11f   :  { %v127_v48 = vmul.f32 %v216_v42, %v122_v45 }
 0x121   :  { %v132_v50 = vadd.f32 %v217_v47, %v127_v48 }
 0x123   :  { %v133_v51 = vpack.c.bf16 %v132_v50, %v131_v49 }
 0x125   :  { %204 = vmatmul.msk.bf16.vlgmr.msra.gmra.mxu0 %vm71_vm0, %v133_v51 }
 0x1a2   :  { %v166_v53 = vpop.f32.mrf.mxu0 }
 0x1a3   :  { %v167_v54 = vadd.f32 %v218_v52, %v166_v53 }
 0x1a5   :  { %v171_v55 = vpack.c.bf16 %v167_v54, %v167_v54 }
 0x1a7   :  { %174 = vst.msk [vmem:[#allocation8] sm:$0xf] %vm173_vm8, %v171_v55 }
 0x1aa   :  { %v168_v56 = vpop.f32.mrf.mxu0 }
 0x1ab   :  { %v169_v57 = vadd.f32 %v218_v52, %v168_v56 }
 0x1ad   :  { %v172_v58 = vpack.c.bf16 %v169_v57, %v169_v57 }
 0x1af   :  { %175 = vst.msk [vmem:[#allocation8 + $0x4] sm:$0xf] %vm173_vm8, %v172_v58 }
 0x1b0   :  { %188 = dma.vmem_to_hbm [thread:$0]  %s181_s14, 128, %s183_s16, [#allocation4], %s332_s9, %s332_s9, %s333_s10  }
 0x1b1   :  { %325 = dma.done.wait [#allocation4], 128  }
 0x1b2   :  { %326 = vsyncadd [#allocation4], 4294967168 }
 0x1b3   :  { %193 = vsyncpa [#allocation3], 1 }
 0x1b4   :  { %194 = vsyncpa [#allocation6], 1 }
 0x1b5   :  { %195 = vsyncpa [#allocation4], 1 }

</bundles_post_ra>
